<compile_context>
chip_gen: v5e
topology: v5e:2x2
jax: 0.10.0
libtpu: 0.0.40
codegen_flags: <defaults>
</compile_context>

<pallas_src>
import functools

import jax
import jax.numpy as jnp
from jax.experimental import pallas as pl
from jax.experimental.pallas import tpu as pltpu

_LANE = 128
_SUBLANE = 8


def _round_up(x, q):
    return (x + q - 1) // q * q


def _vmem_capacity_bytes():
    try:
        return int(pltpu.get_tpu_info().vmem_capacity_bytes)
    except Exception:
        return 64 << 20  # conservative (v7x per-TensorCore)


# ----------------------------------------------------------------------------
# Kernels
# ----------------------------------------------------------------------------

def _kernel_single(x_ref, w_ref, b_ref, o_ref, *, precision):
    """Whole K in one block: no scratch, fused bias add."""
    o_ref[...] = (jnp.dot(x_ref[...], w_ref[...],
                          preferred_element_type=jnp.float32,
                          precision=precision)
                  + b_ref[...]).astype(o_ref.dtype)


def _kernel_kacc_out(x_ref, w_ref, b_ref, o_ref, *, precision):
    """Tiled K, f32 output: accumulate directly into the resident output block."""
    @pl.when(pl.program_id(2) == 0)
    def _init():
        o_ref[...] = jnp.zeros_like(o_ref) + b_ref[...].astype(o_ref.dtype)

    o_ref[...] += jnp.dot(x_ref[...], w_ref[...],
                          preferred_element_type=jnp.float32,
                          precision=precision).astype(o_ref.dtype)


def _kernel_kacc_scratch(x_ref, w_ref, b_ref, o_ref, acc_ref, *, n_k, precision):
    """Tiled K, non-f32 output: f32 VMEM accumulator, cast on the last K step."""
    @pl.when(pl.program_id(2) == 0)
    def _init():
        acc_ref[...] = jnp.zeros_like(acc_ref)

    acc_ref[...] += jnp.dot(x_ref[...], w_ref[...],
                            preferred_element_type=jnp.float32,
                            precision=precision)

    @pl.when(pl.program_id(2) == n_k - 1)
    def _finalize():
        o_ref[...] = (acc_ref[...] + b_ref[...]).astype(o_ref.dtype)


# ----------------------------------------------------------------------------
# Wrapper: y = x2d @ w + b
# ----------------------------------------------------------------------------

def linear(x2d, w, b, *, tm_cap=1024, tn_cap=1024, tk_cap=512):
    m, k = x2d.shape
    k2, n = w.shape
    assert k == k2, (k, k2)
    b = jnp.reshape(b, (1, n))            # accept (n,) or (1, n) bias
    out_dtype = x2d.dtype
    in_item = jnp.dtype(x2d.dtype).itemsize
    out_item = jnp.dtype(out_dtype).itemsize

    # ---- lane-dense output: pad N up to a multiple of 128, slice afterwards.
    n_p = _round_up(n, _LANE)
    if n_p != n:
        w = jnp.pad(w, ((0, 0), (0, n_p - n)))
        b = jnp.pad(b, ((0, 0), (0, n_p - n)))

    # ---- K: keep whole if small; else zero-pad to 128 multiple and tile with a
    #      tk that divides it exactly (no partial/garbage reduction tiles).
    if k <= tk_cap:
        tk, k_p = k, k
    else:
        k_p = _round_up(k, _LANE)
        if k_p != k:
            x2d = jnp.pad(x2d, ((0, 0), (0, k_p - k)))
            w = jnp.pad(w, ((0, k_p - k), (0, 0)))
        tk = (tk_cap // _LANE) * _LANE
        while k_p % tk != 0:
            tk -= _LANE
    n_k = k_p // tk

    # ---- N tiling: collapse the N grid axis whenever N fits a single tile.
    tn = n_p if n_p <= max(tn_cap, _LANE) else tn_cap

    # ---- M tiling: fill the per-generation VMEM budget; keep >=2 M blocks so
    #      both v7x TensorCores get work under the "parallel" semantics.
    vmem_cap = _vmem_capacity_bytes()
    budget = min(int(vmem_cap * 0.45), 48 << 20)
    needs_acc = (n_k > 1) and (jnp.dtype(out_dtype) != jnp.dtype(jnp.float32))
    per_row = 2 * (tn * out_item + tk * in_item) + (tn * 4 if needs_acc else 0)
    fixed = 2 * tk * tn * in_item + 2 * tn * 4
    tm = (max(budget - fixed, per_row * _SUBLANE) // per_row) // _SUBLANE * _SUBLANE
    tm = int(max(_SUBLANE, min(tm, tm_cap)))
    if tm >= m:
        tm = m
    if m > _SUBLANE and pl.cdiv(m, tm) < 2:
        tm = _round_up(pl.cdiv(m, 2), _SUBLANE)

    est_vmem = (2 * tm * tn * out_item + 2 * tm * tk * in_item
                + 2 * tk * tn * in_item + 2 * tn * 4
                + (tm * tn * 4 if needs_acc else 0))
    vmem_limit = int(min(vmem_cap * 0.9, max(est_vmem + (4 << 20), 32 << 20)))

    # HIGHEST keeps f32 numerics vs the PyTorch reference; the op is HBM-bound
    # at small/medium K so the extra MXU passes are hidden.
    precision = (jax.lax.Precision.HIGHEST if k_p <= 2048
                 else jax.lax.Precision.DEFAULT)

    cost = pl.CostEstimate(
        flops=2 * m * n_p * k_p,
        transcendentals=0,
        bytes_accessed=in_item * (m * k_p + k_p * n_p) + out_item * m * n_p + 4 * n_p,
    )

    grid_m, grid_n = pl.cdiv(m, tm), pl.cdiv(n_p, tn)

    if n_k == 1:
        out_padded = pl.pallas_call(
            functools.partial(_kernel_single, precision=precision),
            out_shape=jax.ShapeDtypeStruct((m, n_p), out_dtype),
            grid=(grid_m, grid_n),
            in_specs=[
                pl.BlockSpec((tm, tk), lambda i, j: (i, 0)),   # x tile
                pl.BlockSpec((tk, tn), lambda i, j: (0, j)),   # w tile
                pl.BlockSpec((1, tn), lambda i, j: (0, j)),    # bias tile
            ],
            out_specs=pl.BlockSpec((tm, tn), lambda i, j: (i, j)),
            compiler_params=pltpu.CompilerParams(
                dimension_semantics=("parallel", "parallel"),
                vmem_limit_bytes=vmem_limit),
            cost_estimate=cost,
        )(x2d, w, b)
    else:
        if needs_acc:
            kernel = functools.partial(_kernel_kacc_scratch, n_k=n_k,
                                       precision=precision)
            scratch = [pltpu.VMEM((tm, tn), jnp.float32)]
        else:
            kernel = functools.partial(_kernel_kacc_out, precision=precision)
            scratch = []
        out_padded = pl.pallas_call(
            kernel,
            out_shape=jax.ShapeDtypeStruct((m, n_p), out_dtype),
            grid=(grid_m, grid_n, n_k),
            in_specs=[
                pl.BlockSpec((tm, tk), lambda i, j, kk: (i, kk)),   # x tile
                pl.BlockSpec((tk, tn), lambda i, j, kk: (kk, j)),   # w tile
                pl.BlockSpec((1, tn), lambda i, j, kk: (0, j)),     # bias tile
            ],
            out_specs=pl.BlockSpec((tm, tn), lambda i, j, kk: (i, j)),
            scratch_shapes=scratch,
            compiler_params=pltpu.CompilerParams(
                dimension_semantics=("parallel", "parallel", "arbitrary"),
                vmem_limit_bytes=vmem_limit),
            cost_estimate=cost,
        )(x2d, w, b)

    return out_padded if n_p == n else out_padded[:, :n]


# ----------------------------------------------------------------------------
# TemporalTokenEmbedding.forward
# ----------------------------------------------------------------------------

def temporal_token_embedding(x, w, b, *, force_pallas=False):
    """Equivalent of: self.embedding(x), embedding = nn.Linear(input_dim, embedding_dim)."""
    *lead, din = x.shape
    m = 1
    for d in lead:
        m *= d
    n = w.shape[1]
    x2d = x.reshape(m, din)
    if not force_pallas and m * n < 128 * 256:
        # Tiny problem: pallas_call fixed overhead dominates; let XLA fuse it.
        y = jnp.dot(x2d, w, precision=jax.lax.Precision.HIGHEST) + jnp.reshape(b, (1, n))
    else:
        y = linear(x2d, w, b)
    return y.reshape(*lead, n)


# ----------------------------------------------------------------------------

if __name__ == "__main__":
    key = jax.random.PRNGKey(0)

    def init_linear(k, din, dout):
        # PyTorch nn.Linear init bounds: uniform +/- 1/sqrt(fan_in).
        kw, kb = jax.random.split(k)
        bound = 1.0 / (din ** 0.5)
        w = jax.random.uniform(kw, (din, dout), jnp.float32, -bound, bound)
        b = jax.random.uniform(kb, (dout,), jnp.float32, -bound, bound)
        return w, b

    def ref_fn(x, w, b):
        m = x.shape[0] * x.shape[1]
        y = jnp.dot(x.reshape(m, -1), w,
                    precision=jax.lax.Precision.HIGHEST) + jnp.reshape(b, (1, -1))
        return y.reshape(x.shape[0], x.shape[1], -1)

    fwd_pallas = jax.jit(functools.partial(temporal_token_embedding, force_pallas=True))
    fwd_auto = jax.jit(temporal_token_embedding)

    # ---- Test 1: module-scale shapes (batch=2, seq=8, input_dim=8, embedding_dim=32).
    k1, k2, key = jax.random.split(key, 3)
    w1, b1 = init_linear(k1, 8, 32)
    x1 = jax.random.normal(k2, (2, 8, 8), jnp.float32)

    out1 = jax.block_until_ready(fwd_pallas(x1, w1, b1))
    ref1 = ref_fn(x1, w1, b1)
    assert out1.shape == (2, 8, 32)
    assert bool(jnp.all(jnp.isfinite(out1)))
    assert bool(jnp.allclose(out1, ref1, atol=1e-5, rtol=1e-5))

    # auto-dispatch (small-shape bypass) must agree as well
    out1b = jax.block_until_ready(fwd_auto(x1, w1, b1))
    assert bool(jnp.allclose(out1b, ref1, atol=1e-5, rtol=1e-5))

    # ---- Test 2: exercise K tiling (K > 512) and N padding (N % 128 != 0).
    k3, k4 = jax.random.split(key)
    w2, b2 = init_linear(k3, 640, 96)
    x2 = jax.random.normal(k4, (2, 64, 640), jnp.float32)

    out2 = jax.block_until_ready(fwd_pallas(x2, w2, b2))
    ref2 = ref_fn(x2, w2, b2)
    assert out2.shape == (2, 64, 96)
    assert bool(jnp.all(jnp.isfinite(out2)))
    assert bool(jnp.allclose(out2, ref2, atol=1e-4, rtol=1e-4))

    print("KERNEL_OK")
</pallas_src>

<mosaic_0001>
module attributes {stable_mosaic.version = 11 : i64} {
  func.func @_kernel_single(%arg0: i32, %arg1: i32, %arg2: memref<8x8xf32, #tpu.memory_space<vmem>>, %arg3: memref<8x128xf32, #tpu.memory_space<vmem>>, %arg4: memref<1x128xf32, #tpu.memory_space<vmem>>, %arg5: memref<8x128xf32, #tpu.memory_space<vmem>>) attributes {dimension_semantics = [#tpu.dimension_semantics<parallel>, #tpu.dimension_semantics<parallel>], iteration_bounds = array<i64: 2, 1>, scalar_prefetch = 0 : i64, scratch_operands = 0 : i64, tpu.core_type = #tpu.core_type<tc>, window_params = [{transform_indices = @transform_0, window_bounds = array<i64: 8, 8>}, {transform_indices = @transform_1, window_bounds = array<i64: 8, 128>}, {transform_indices = @transform_2, window_bounds = array<i64: 1, 128>}, {transform_indices = @transform_3, window_bounds = array<i64: 8, 128>}]} {
    %c0 = arith.constant 0 : index
    %c0_0 = arith.constant 0 : index
    %0 = vector.load %arg2[%c0, %c0_0] : memref<8x8xf32, #tpu.memory_space<vmem>>, vector<8x8xf32>
    %c0_1 = arith.constant 0 : index
    %c0_2 = arith.constant 0 : index
    %1 = vector.load %arg3[%c0_1, %c0_2] : memref<8x128xf32, #tpu.memory_space<vmem>>, vector<8x128xf32>
    %cst = arith.constant dense<0.000000e+00> : vector<8x128xf32>
    %2 = tpu.matmul %0, %1, %cst {dimension_numbers = #tpu.dot_dimension_numbers<[1], [0], [0], [1], [0, 0, 1, 1], [], []>, precision = #tpu.contract_precision<fp32>} : vector<8x8xf32>, vector<8x128xf32>, vector<8x128xf32> -> vector<8x128xf32>
    %c0_3 = arith.constant 0 : index
    %c0_4 = arith.constant 0 : index
    %3 = vector.load %arg4[%c0_3, %c0_4] : memref<1x128xf32, #tpu.memory_space<vmem>>, vector<1x128xf32>
    %4 = vector.broadcast %3 : vector<1x128xf32> to vector<8x128xf32>
    %5 = arith.addf %2, %4 : vector<8x128xf32>
    %c0_5 = arith.constant 0 : index
    %c0_6 = arith.constant 0 : index
    %6 = vector.load %arg5[%c0_5, %c0_6] : memref<8x128xf32, #tpu.memory_space<vmem>>, vector<8x128xf32>
    tpu.vector_store %arg5[%c0_5, %c0_6], %5 {strides = array<i32>} : memref<8x128xf32, #tpu.memory_space<vmem>>, vector<8x128xf32>,
    return
  }
  func.func @transform_0(%arg0: i32, %arg1: i32) -> (i32, i32) {
    %c0_i32 = arith.constant 0 : i32
    %c0_i32_0 = arith.constant 0 : i32
    return %arg0, %c0_i32 : i32, i32
  }
  func.func @transform_1(%arg0: i32, %arg1: i32) -> (i32, i32) {
    %c0_i32 = arith.constant 0 : i32
    %c0_i32_0 = arith.constant 0 : i32
    return %c0_i32, %arg1 : i32, i32
  }
  func.func @transform_2(%arg0: i32, %arg1: i32) -> (i32, i32) {
    %c0_i32 = arith.constant 0 : i32
    %c0_i32_0 = arith.constant 0 : i32
    return %c0_i32, %arg1 : i32, i32
  }
  func.func @transform_3(%arg0: i32, %arg1: i32) -> (i32, i32) {
    %c0_i32 = arith.constant 0 : i32
    return %arg0, %arg1 : i32, i32
  }
}

</mosaic_0001>

<bundles_post_ra>
// kernel: temporal_token_embedding.1
= control target key start
LH: loop header
LB: loop body
LE: loop exit
PB: predicated region body
PF: predicated region fallthrough
CT: control target
= control target key end

     0   :  { %s553_s12 = smov 0   ;;  %s555_s13 = smov 0   ;;  %s599_s0 = inlined_call_operand.vmem [shape: f32[16,8], index: 0, kind: input, shape index: {}]   ;;  %s600_s1 = inlined_call_operand.vmem [shape: f32[8,128], index: 1, kind: input, shape index: {}]   ;;  %s601_s2 = inlined_call_operand.vmem [shape: f32[1,128], index: 2, kind: input, shape index: {}]   ;;  %s602_s3 = inlined_call_operand.vmem [shape: f32[16,128], index: 3, kind: output, shape index: {}]  }
   0x1   :  { %s557_s14 = smov 0  }
   0x2 LB: > { %s25_s15 = sadd.s32 1, %s527_s13  ;;  %p479_p0 = scmp.ge.s32.totalorder %s531_s14, 1  ;;  %s531_s14 = sphi %s557_s14, %s13_s14   ;;  %s527_s13 = sphi %s555_s13, %s604_s13   ;;  %s523_s12 = sphi %s553_s12, %s603_s12  }
   0x3   : > { %p27_p1 = scmp.ge.s32.totalorder %s25_s15, 2  ;;  %p167_p2 = scmp.lt.s32.totalorder %s531_s14, 3 }
   0x5   : > { %s606_s15 = smov (%p27_p1, %s25_s15), 0  ;;  %p168_p3 = pnand %p479_p0, %p167_p2 }
   0x6   : > { %p199_p4 = scmp.lt.s32.totalorder (!%p168_p3), %s523_s12, 1 }
   0x7   : > { %171 = sbr.rel (%p168_p3) target bundleno = 166 (0xa6), region = 32 }
   0xc   : > { %v218_v0 = vld [vmem:[%s600_s1] sm:$0xff]  ;;  %s608_s12 = smov (!%p199_p4, %s523_s12), 1  ;;  %vm223_vm0 = vcmask 64512  }
   0xd   : > { %v242_v1 = vand.u32 4294901760, %v218_v0  ;;  %s480_s18 = sshll.u32 %s608_s12, 3  ;;  %v508_v13 = vld [vmem:[%s601_s2] ss:$0 sm:$0xff] }
   0xe   : > { %s202_s21 = scalar_lea.vmem %s599_s0, %s480_s18  ;;  %s216_s26 = scalar_lea.vmem %s602_s3, %s480_s18 }
   0xf   : > { %v269_v2 = vsub.f32 %v218_v0, %v242_v1  ;;  %243 = vmatpush.msra.mxu0 %v242_v1  ;;  %319 = vmatpush.msra.mxu3 %v242_v1  ;;  %v217_v4 = vld [vmem:[%s202_s21] sm:$0xff] }
  0x10   : > { %v225_v5 = vsel %vm223_vm0, %v217_v4, 0 }
  0x11   : > { %296 = vmatpush.msra.mxu2 %v269_v2  ;;  %v270_v3 = vand.u32 4294901760, %v269_v2  ;;  %v244_v7 = vand.u32 4294901760, %v225_v5 }
  0x13   : > { %345 = vmatpush.msrb.mxu0 %v270_v3  ;;  %v271_v6 = vsub.f32 %v269_v2, %v270_v3  ;;  %v245_v9 = vsub.f32 %v225_v5, %v244_v7 }
  0x15   : > { %v272_v8 = vand.u32 4294901760, %v271_v6  ;;  %299 = vmatmul.f32.vlgmr.msra.gmra.mxu2 %v245_v9  ;;  %v246_v10 = vand.u32 4294901760, %v245_v9 }
  0x17   : > { %273 = vmatpush.msra.mxu1 %v272_v8  ;;  %v247_v11 = vsub.f32 %v245_v9, %v246_v10  ;;  %323 = vmatmul.f32.vlgmr.msra.gmra.mxu3 %v246_v10 }
  0x18   : > { %275 = vmatmul.f32.vlgmr.msra.gmra.mxu1 %v244_v7 }
  0x19   : > { %367 = vmatpush.msrb.mxu1 %v242_v1  ;;  %v248_v12 = vand.u32 4294901760, %v247_v11 }
  0x1b   : > { %249 = vmatmul.f32.vlgmr.msra.gmra.mxu0 %v248_v12 }
  0x20   : > { %369 = vmatmul.f32.vlgmr.msrb.gmra.mxu1 %v244_v7 }
  0x23   : > { %347 = vmatmul.f32.vlgmr.msrb.gmra.mxu0 %v244_v7 }
  0x95   : > { %v276_v14 = vpop.f32.mrf.mxu1 }
  0x98   : > { %v250_v15 = vpop.f32.mrf.mxu0  ;;  %v300_v17 = vpop.f32.mrf.mxu2 }
  0x99   : > { %v251_v16 = vadd.f32 %v508_v13, %v250_v15 }
  0x9a   : > { %v324_v19 = vpop.f32.mrf.mxu3 }
  0x9b   : > { %v277_v18 = vadd.f32 %v276_v14, %v251_v16 }
  0x9d   : > { %v301_v20 = vadd.f32 %v300_v17, %v277_v18  ;;  %v370_v23 = vpop.f32.mrf.mxu1 }
  0x9f   : > { %v325_v21 = vadd.f32 %v324_v19, %v301_v20 }
  0xa0   : > { %v348_v22 = vpop.f32.mrf.mxu0 }
  0xa1   : > { %v349_v24 = vadd.f32 %v348_v22, %v325_v21 }
  0xa3   : > { %v371_v25 = vadd.f32 %v370_v23, %v349_v24 }
  0xa5   : > { %373 = vst [vmem:[%s216_s26] sm:$0xff] %v371_v25 }
  0xa6 PF: > { %s13_s14 = sadd.s32 1, %s531_s14   ;;  %s603_s12 = smov %s527_s13 }
  0xa7   : > { %p10_p5 = scmp.ge.s32.totalorder %s13_s14, 4   ;;  %s604_s13 = smov %s606_s15 }
  0xa9   :  { %12 = sbr.rel (!%p10_p5) target bundleno = 2 (0x2), region = 68 }

</bundles_post_ra>
